<compile_context>
chip_gen: v7x
topology: tpu7x:2x2x1
jax: 0.10.0
libtpu: 0.0.40
codegen_flags: <defaults>
</compile_context>

<pallas_src>
import jax
import jax.numpy as jnp
import numpy as np
from jax.experimental import pallas as pl
from jax.experimental.pallas import tpu as pltpu

# ---- module hyper-parameters (synthetic, matching the PyTorch __init__) ----
NUM_CLASSES = 10
CLASS_DIM = 10
IMAGE_SIZE = (16, 16)                     # small spatial size for the synthetic run
IMG_SHAPE = (3, *IMAGE_SIZE)              # (C, H, W)
IMG_DIM = int(np.prod(IMG_SHAPE))         # 3*16*16 = 768  (6 x 128 lanes)
IN_DIM = IMG_DIM + CLASS_DIM              # 778 (only used for init fan-in)
H1, H2, OUT = 512, 256, 1
OUT_PAD = 128                             # lane-dense padded output width


def _round_up(x, m):
    return ((x + m - 1) // m) * m


def mlp_kernel(img_ref, clsb_ref,
               w1_ref, w2_ref, b2_ref, w3_ref, b3_ref,
               o_ref):
    """3-layer MLP: (Linear -> LeakyReLU) x2 -> Linear -> Sigmoid.

    Layer-1's class contribution (emb[label] @ W1_cls + b1) arrives as a
    precomputed per-row bias tile, so only the K=768 image matmul hits the MXU.
    """
    # layer 1: img @ W1_img on the MXU (f32 accumulation) + per-class bias (VPU)
    h = (jnp.dot(img_ref[...], w1_ref[...], preferred_element_type=jnp.float32)
         + clsb_ref[...].astype(jnp.float32))                        # (TB, 512) f32
    h = jnp.maximum(h, 0.2 * h)                                      # LeakyReLU(0.2)

    # layer 2
    h = jnp.dot(h.astype(jnp.bfloat16), w2_ref[...],
                preferred_element_type=jnp.float32) + b2_ref[...]    # (TB, 256) f32
    h = jnp.maximum(h, 0.2 * h)

    # layer 3 (padded to 128 output lanes -> unmasked lane-dense store)
    z = jnp.dot(h.astype(jnp.bfloat16), w3_ref[...],
                preferred_element_type=jnp.float32) + b3_ref[...]    # (TB, 128) f32
    # sigmoid: exp on the EUP, approx reciprocal on the EUP (keeps divide off VALU)
    o_ref[...] = pl.reciprocal(1.0 + jnp.exp(-z), approx=True).astype(o_ref.dtype)


def init_params(key):
    """Deterministic parameter init (PyTorch-Linear-style uniform bounds)."""
    ks = jax.random.split(key, 7)

    def unif(k, shape, fan_in):
        bound = 1.0 / np.sqrt(fan_in)
        return jax.random.uniform(k, shape, jnp.float32, -bound, bound)

    emb = jax.random.normal(ks[0], (NUM_CLASSES, CLASS_DIM), jnp.float32)
    # stored as (in, out) == transpose of torch's (out, in) weight
    w1 = unif(ks[1], (IN_DIM, H1), IN_DIM)
    b1 = unif(ks[2], (1, H1), IN_DIM)
    w2 = unif(ks[3], (H1, H2), H1)
    b2 = unif(ks[4], (1, H2), H1)
    w3 = unif(ks[5], (H2, OUT), H2)
    b3 = unif(ks[6], (1, OUT), H2)

    # split the first-layer weight: image part stays a bf16 MXU operand,
    # class part + b1 is folded into a tiny (10, 512) per-class bias table.
    w1_img = w1[:IMG_DIM].astype(jnp.bfloat16)                        # (768, 512)
    cls_bias = (emb @ w1[IMG_DIM:] + b1).astype(jnp.bfloat16)         # (10, 512)

    # pad the last layer to 128 output columns (zero-filled -> exact [:, :1] slice)
    w3p = jnp.zeros((H2, OUT_PAD), jnp.bfloat16).at[:, :OUT].set(w3.astype(jnp.bfloat16))
    b3p = jnp.zeros((1, OUT_PAD), jnp.float32).at[:, :OUT].set(b3)

    return dict(
        w1_img=w1_img, cls_bias=cls_bias,
        w2=w2.astype(jnp.bfloat16), b2=b2,
        w3=w3p, b3=b3p,
    )


def _pick_batch_tile(B, batch_tile):
    """Sublane-friendly tile; >=2 grid steps for moderate B (v7x megacore),
    multiples of 256 for large B (v6e/v7x 2x256^2 MXU M-tiles)."""
    if B <= 16:
        return _round_up(B, 8)
    half = -(-B // 2)                                  # ceil(B / 2)
    tb = _round_up(half, 256) if half >= 256 else _round_up(half, 8)
    return min(tb, batch_tile)


def discriminator_forward(params, img, labels, *, batch_tile=1024):
    """img: (B, 3, H, W) float32, labels: (B,) int -> (B, 1) float32."""
    B = img.shape[0]
    img_flat = img.reshape(B, -1).astype(jnp.bfloat16)                # (B, 768)
    labels = labels.astype(jnp.int32)
    # TODO(synk): the embedding/bias gather stays as plain-JAX glue (10x512 table, negligible).
    clsb = jnp.take(params["cls_bias"], labels, axis=0)               # (B, 512) bf16

    # pad batch to a tile multiple; grid is parallel over batch tiles
    tb = _pick_batch_tile(B, batch_tile)
    b_pad = _round_up(B, tb)
    if b_pad != B:
        img_flat = jnp.pad(img_flat, ((0, b_pad - B), (0, 0)))
        clsb = jnp.pad(clsb, ((0, b_pad - B), (0, 0)))
    grid = (b_pad // tb,)

    resident = lambda shape: pl.BlockSpec(shape, lambda i: (0, 0))    # weights stay put

    out = pl.pallas_call(
        mlp_kernel,
        out_shape=jax.ShapeDtypeStruct((b_pad, OUT_PAD), jnp.float32),
        grid=grid,
        in_specs=[
            pl.BlockSpec((tb, IMG_DIM), lambda i: (i, 0)),            # image tile
            pl.BlockSpec((tb, H1), lambda i: (i, 0)),                 # per-row class bias tile
            resident(params["w1_img"].shape),
            resident(params["w2"].shape),
            resident(params["b2"].shape),
            resident(params["w3"].shape),
            resident(params["b3"].shape),
        ],
        out_specs=pl.BlockSpec((tb, OUT_PAD), lambda i: (i, 0)),
        compiler_params=pltpu.CompilerParams(
            dimension_semantics=("parallel",),
            vmem_limit_bytes=48 * 1024 * 1024),
    )(img_flat, clsb,
      params["w1_img"], params["w2"], params["b2"], params["w3"], params["b3"])

    return out[:B, :OUT]                                              # (B, 1)


def _reference_forward(params, img, labels):
    """Pure-JAX reference with identical dtype handling (bf16 matmuls, f32 accum)."""
    B = img.shape[0]
    x_img = img.reshape(B, -1).astype(jnp.bfloat16)
    clsb = jnp.take(params["cls_bias"], labels.astype(jnp.int32), axis=0)
    h = (jnp.dot(x_img, params["w1_img"], preferred_element_type=jnp.float32)
         + clsb.astype(jnp.float32))
    h = jnp.maximum(h, 0.2 * h)
    h = jnp.dot(h.astype(jnp.bfloat16), params["w2"],
                preferred_element_type=jnp.float32) + params["b2"]
    h = jnp.maximum(h, 0.2 * h)
    z = jnp.dot(h.astype(jnp.bfloat16), params["w3"],
                preferred_element_type=jnp.float32) + params["b3"]
    return jax.nn.sigmoid(z)[:, :OUT]


if __name__ == "__main__":
    key = jax.random.PRNGKey(0)
    k_param, k_img, k_lab = jax.random.split(key, 3)

    params = init_params(k_param)

    B = 2
    img = jax.random.normal(k_img, (B, *IMG_SHAPE), jnp.float32)      # (2, 3, 16, 16)
    labels = jax.random.randint(k_lab, (B,), 0, NUM_CLASSES, jnp.int32)

    out = discriminator_forward(params, img, labels)
    out = jax.block_until_ready(out)

    ref = _reference_forward(params, img, labels)
    assert out.shape == (B, OUT), out.shape
    # tolerance covers the approx-reciprocal sigmoid (~few e-4) on top of bf16 matmuls
    np.testing.assert_allclose(np.asarray(out), np.asarray(ref), rtol=2e-3, atol=2e-3)

    print("KERNEL_OK")
</pallas_src>

<mosaic_0001>
module attributes {stable_mosaic.version = 11 : i64} {
  func.func @mlp_kernel(%arg0: i32, %arg1: memref<8x768xbf16, #tpu.memory_space<vmem>>, %arg2: memref<8x512xbf16, #tpu.memory_space<vmem>>, %arg3: memref<768x512xbf16, #tpu.memory_space<vmem>>, %arg4: memref<512x256xbf16, #tpu.memory_space<vmem>>, %arg5: memref<1x256xf32, #tpu.memory_space<vmem>>, %arg6: memref<256x128xbf16, #tpu.memory_space<vmem>>, %arg7: memref<1x128xf32, #tpu.memory_space<vmem>>, %arg8: memref<8x128xf32, #tpu.memory_space<vmem>>) attributes {dimension_semantics = [#tpu.dimension_semantics<parallel>], iteration_bounds = array<i64: 1>, scalar_prefetch = 0 : i64, scratch_operands = 0 : i64, tpu.core_type = #tpu.core_type<tc>, window_params = [{transform_indices = @transform_0, window_bounds = array<i64: 8, 768>}, {transform_indices = @transform_1, window_bounds = array<i64: 8, 512>}, {pipeline_mode = #tpu.pipeline_mode<synchronous>, transform_indices = @transform_2, window_bounds = array<i64: 768, 512>}, {pipeline_mode = #tpu.pipeline_mode<synchronous>, transform_indices = @transform_3, window_bounds = array<i64: 512, 256>}, {pipeline_mode = #tpu.pipeline_mode<synchronous>, transform_indices = @transform_4, window_bounds = array<i64: 1, 256>}, {pipeline_mode = #tpu.pipeline_mode<synchronous>, transform_indices = @transform_5, window_bounds = array<i64: 256, 128>}, {pipeline_mode = #tpu.pipeline_mode<synchronous>, transform_indices = @transform_6, window_bounds = array<i64: 1, 128>}, {transform_indices = @transform_7, window_bounds = array<i64: 8, 128>}]} {
    %c0 = arith.constant 0 : index
    %c0_0 = arith.constant 0 : index
    %0 = vector.load %arg1[%c0, %c0_0] : memref<8x768xbf16, #tpu.memory_space<vmem>>, vector<8x768xbf16>
    %c0_1 = arith.constant 0 : index
    %c0_2 = arith.constant 0 : index
    %1 = vector.load %arg3[%c0_1, %c0_2] : memref<768x512xbf16, #tpu.memory_space<vmem>>, vector<768x512xbf16>
    %cst = arith.constant dense<0.000000e+00> : vector<8x512xf32>
    %2 = tpu.matmul %0, %1, %cst {dimension_numbers = #tpu.dot_dimension_numbers<[1], [0], [0], [1], [0, 0, 1, 1], [], []>} : vector<8x768xbf16>, vector<768x512xbf16>, vector<8x512xf32> -> vector<8x512xf32>
    %c0_3 = arith.constant 0 : index
    %c0_4 = arith.constant 0 : index
    %3 = vector.load %arg2[%c0_3, %c0_4] : memref<8x512xbf16, #tpu.memory_space<vmem>>, vector<8x512xbf16>
    %4 = arith.extf %3 : vector<8x512xbf16> to vector<8x512xf32>
    %5 = arith.addf %2, %4 : vector<8x512xf32>
    %cst_5 = arith.constant 2.000000e-01 : f32
    %6 = vector.broadcast %cst_5 : f32 to vector<8x512xf32>
    %7 = arith.mulf %6, %5 : vector<8x512xf32>
    %8 = arith.maximumf %5, %7 : vector<8x512xf32>
    %9 = arith.truncf %8 : vector<8x512xf32> to vector<8x512xbf16>
    %c0_6 = arith.constant 0 : index
    %c0_7 = arith.constant 0 : index
    %10 = vector.load %arg4[%c0_6, %c0_7] : memref<512x256xbf16, #tpu.memory_space<vmem>>, vector<512x256xbf16>
    %cst_8 = arith.constant dense<0.000000e+00> : vector<8x256xf32>
    %11 = tpu.matmul %9, %10, %cst_8 {dimension_numbers = #tpu.dot_dimension_numbers<[1], [0], [0], [1], [0, 0, 1, 1], [], []>} : vector<8x512xbf16>, vector<512x256xbf16>, vector<8x256xf32> -> vector<8x256xf32>
    %c0_9 = arith.constant 0 : index
    %c0_10 = arith.constant 0 : index
    %12 = vector.load %arg5[%c0_9, %c0_10] : memref<1x256xf32, #tpu.memory_space<vmem>>, vector<1x256xf32>
    %13 = vector.broadcast %12 : vector<1x256xf32> to vector<8x256xf32>
    %14 = arith.addf %11, %13 : vector<8x256xf32>
    %cst_11 = arith.constant 2.000000e-01 : f32
    %15 = vector.broadcast %cst_11 : f32 to vector<8x256xf32>
    %16 = arith.mulf %15, %14 : vector<8x256xf32>
    %17 = arith.maximumf %14, %16 : vector<8x256xf32>
    %18 = arith.truncf %17 : vector<8x256xf32> to vector<8x256xbf16>
    %c0_12 = arith.constant 0 : index
    %c0_13 = arith.constant 0 : index
    %19 = vector.load %arg6[%c0_12, %c0_13] : memref<256x128xbf16, #tpu.memory_space<vmem>>, vector<256x128xbf16>
    %cst_14 = arith.constant dense<0.000000e+00> : vector<8x128xf32>
    %20 = tpu.matmul %18, %19, %cst_14 {dimension_numbers = #tpu.dot_dimension_numbers<[1], [0], [0], [1], [0, 0, 1, 1], [], []>} : vector<8x256xbf16>, vector<256x128xbf16>, vector<8x128xf32> -> vector<8x128xf32>
    %c0_15 = arith.constant 0 : index
    %c0_16 = arith.constant 0 : index
    %21 = vector.load %arg7[%c0_15, %c0_16] : memref<1x128xf32, #tpu.memory_space<vmem>>, vector<1x128xf32>
    %22 = vector.broadcast %21 : vector<1x128xf32> to vector<8x128xf32>
    %23 = arith.addf %20, %22 : vector<8x128xf32>
    %cst_17 = arith.constant 0.000000e+00 : f32
    %24 = vector.broadcast %cst_17 : f32 to vector<8x128xf32>
    %25 = arith.subf %24, %23 : vector<8x128xf32>
    %26 = math.exp %25 : vector<8x128xf32>
    %cst_18 = arith.constant 1.000000e+00 : f32
    %27 = vector.broadcast %cst_18 : f32 to vector<8x128xf32>
    %28 = arith.addf %27, %26 : vector<8x128xf32>
    %29 = tpu.reciprocal %28 {approx = true} : vector<8x128xf32> -> vector<8x128xf32>
    %c0_19 = arith.constant 0 : index
    %c0_20 = arith.constant 0 : index
    %30 = vector.load %arg8[%c0_19, %c0_20] : memref<8x128xf32, #tpu.memory_space<vmem>>, vector<8x128xf32>
    tpu.vector_store %arg8[%c0_19, %c0_20], %29 {strides = array<i32>} : memref<8x128xf32, #tpu.memory_space<vmem>>, vector<8x128xf32>,
    return
  }
  func.func @transform_0(%arg0: i32) -> (i32, i32) {
    %c0_i32 = arith.constant 0 : i32
    %c0_i32_0 = arith.constant 0 : i32
    return %arg0, %c0_i32 : i32, i32
  }
  func.func @transform_1(%arg0: i32) -> (i32, i32) {
    %c0_i32 = arith.constant 0 : i32
    %c0_i32_0 = arith.constant 0 : i32
    return %arg0, %c0_i32 : i32, i32
  }
  func.func @transform_2(%arg0: i32) -> (i32, i32) {
    %c0_i32 = arith.constant 0 : i32
    %c0_i32_0 = arith.constant 0 : i32
    %c0_i32_1 = arith.constant 0 : i32
    return %c0_i32, %c0_i32_0 : i32, i32
  }
  func.func @transform_3(%arg0: i32) -> (i32, i32) {
    %c0_i32 = arith.constant 0 : i32
    %c0_i32_0 = arith.constant 0 : i32
    %c0_i32_1 = arith.constant 0 : i32
    return %c0_i32, %c0_i32_0 : i32, i32
  }
  func.func @transform_4(%arg0: i32) -> (i32, i32) {
    %c0_i32 = arith.constant 0 : i32
    %c0_i32_0 = arith.constant 0 : i32
    %c0_i32_1 = arith.constant 0 : i32
    return %c0_i32, %c0_i32_0 : i32, i32
  }
  func.func @transform_5(%arg0: i32) -> (i32, i32) {
    %c0_i32 = arith.constant 0 : i32
    %c0_i32_0 = arith.constant 0 : i32
    %c0_i32_1 = arith.constant 0 : i32
    return %c0_i32, %c0_i32_0 : i32, i32
  }
  func.func @transform_6(%arg0: i32) -> (i32, i32) {
    %c0_i32 = arith.constant 0 : i32
    %c0_i32_0 = arith.constant 0 : i32
    %c0_i32_1 = arith.constant 0 : i32
    return %c0_i32, %c0_i32_0 : i32, i32
  }
  func.func @transform_7(%arg0: i32) -> (i32, i32) {
    %c0_i32 = arith.constant 0 : i32
    %c0_i32_0 = arith.constant 0 : i32
    return %arg0, %c0_i32 : i32, i32
  }
}

</mosaic_0001>

<bundles_post_ra>
// kernel: tpu_custom_call.1
= control target key start
LH: loop header
LB: loop body
LE: loop exit
PB: predicated region body
PF: predicated region fallthrough
CT: control target
= control target key end

     0   :  { %12 = vsyncpa [#allocation3], 0  ;;  %s3275_s0 = inlined_call_operand.hbm [shape: bf16[8,768], index: 0, kind: input, shape index: {}]   ;;  %s3276_s1 = inlined_call_operand.hbm [shape: bf16[8,512], index: 1, kind: input, shape index: {}]   ;;  %s3277_s2 = inlined_call_operand.hbm [shape: bf16[768,512], index: 2, kind: input, shape index: {}]   ;;  %s3278_s3 = inlined_call_operand.hbm [shape: bf16[512,256], index: 3, kind: input, shape index: {}]   ;;  %s3279_s4 = inlined_call_operand.vmem [shape: f32[1,256], index: 4, kind: input, shape index: {}]   ;;  %s3280_s5 = inlined_call_operand.hbm [shape: bf16[256,128], index: 5, kind: input, shape index: {}]   ;;  %s3281_s6 = inlined_call_operand.vmem [shape: f32[1,128], index: 6, kind: input, shape index: {}]   ;;  %s3282_s7 = inlined_call_operand.hbm [shape: f32[8,128], index: 7, kind: output, shape index: {}]  }
   0x1   :  { %13 = vsyncpa [#allocation6], 0 }
   0x2   :  { %14 = vsyncpa [#allocation9], 0 }
   0x3   :  { %15 = vsyncpa [#allocation4], 0  ;;  %s3101_s24 = smov [#allocation5]   ;;  %s3102_s26 = smov [#allocation8]  }
   0x4   :  { %s32_s25 = sshll.u32 %s3101_s24, 4  ;;  %s53_s27 = sshll.u32 %s3102_s26, 4  ;;  %s33_s25 = int_to_ptr.vmem [resolvable:$true] %s32_s25  ;;  %s3153_s27 = int_to_ptr.vmem [resolvable:$true] %s53_s27 }
   0x5   :  { %s2961_s30 = scalar_lea.hbm %s3276_s1, 256 }
   0x6   :  { %p2962_p0 = scmp.ne.s32.totalorder %s3276_s1, %s2961_s30  ;;  %p2965_p1 = scmp.lt.u32.totalorder %s2961_s30, %s3276_s1 }
   0x8   :  { %p2967_p2 = pnand %p2965_p1, %p2962_p0 }
   0xa   :  { %2970 = shalt.err (!%p2967_p2)
}
   0xb   :  { %s2971_s12 = scalar_lea.vmem %s33_s25, 256  ;;  %p2976_p4 = scmp.lt.s32.totalorder %s33_s25, %s33_s25 }
   0xc   :  { %p2972_p3 = scmp.ne.s32.totalorder %s33_s25, %s2971_s12  ;;  %p2977_p5 = scmp.lt.s32.totalorder %s2971_s12, %s2971_s12 }
   0xe   :  { %p2978_p6 = por %p2977_p5, %p2976_p4 }
  0x10   :  { %p2979_p7 = pnand %p2978_p6, %p2972_p3 }
  0x12   :  { %2982 = shalt.err (!%p2979_p7)
}
  0x13   :  { %35 = dma.hbm_to_vmem [thread:$0]  %s3276_s1, 256, %s33_s25, [#allocation6]  }
  0x14   :  { %s2983_s17 = scalar_lea.hbm %s3278_s3, 8192 }
  0x15   :  { %p2984_p8 = scmp.ne.s32.totalorder %s3278_s3, %s2983_s17  ;;  %p2987_p9 = scmp.lt.u32.totalorder %s2983_s17, %s3278_s3 }
  0x17   :  { %p2989_p10 = pnand %p2987_p9, %p2984_p8 }
  0x19   :  { %2992 = shalt.err (!%p2989_p10)
}
  0x1a   :  { %s2993_s22 = scalar_lea.vmem %s3153_s27, 8192  ;;  %p2998_p12 = scmp.lt.s32.totalorder %s3153_s27, %s3153_s27 }
  0x1b   :  { %p2994_p11 = scmp.ne.s32.totalorder %s3153_s27, %s2993_s22  ;;  %p2999_p13 = scmp.lt.s32.totalorder %s2993_s22, %s2993_s22 }
  0x1d   :  { %p3000_p0 = por %p2999_p13, %p2998_p12 }
  0x1f   :  { %p3001_p1 = pnand %p3000_p0, %p2994_p11 }
  0x21   :  { %3004 = shalt.err (!%p3001_p1)
}
  0x22   :  { %s3103_s1 = smov 128   ;;  %s3104_s23 = smov 8  }
  0x23   :  { %59 = dma.hbm_to_vmem [thread:$0]  %s3278_s3, 8192, %s3153_s27, [#allocation9], %s3103_s1, %s3103_s1, %s3104_s23  }
  0x24   :  { %s3105_s26 = smov [#allocation2]   ;;  %s3106_s29 = smov [#allocation7]  }
  0x25   :  { %s22_s28 = sshll.u32 %s3105_s26, 4  ;;  %s41_s30 = sshll.u32 %s3106_s29, 4  ;;  %s23_s28 = int_to_ptr.vmem [resolvable:$true] %s22_s28  ;;  %s3184_s30 = int_to_ptr.vmem [resolvable:$true] %s41_s30 }
  0x26   :  { %s3005_s10 = scalar_lea.hbm %s3275_s0, 384 }
  0x27   :  { %p3006_p2 = scmp.ne.s32.totalorder %s3275_s0, %s3005_s10  ;;  %p3009_p3 = scmp.lt.u32.totalorder %s3005_s10, %s3275_s0 }
  0x29   :  { %p3011_p4 = pnand %p3009_p3, %p3006_p2 }
  0x2b   :  { %3014 = shalt.err (!%p3011_p4)
}
  0x2c   :  { %s3015_s3 = scalar_lea.vmem %s23_s28, 384  ;;  %p3020_p6 = scmp.lt.s32.totalorder %s23_s28, %s23_s28 }
  0x2d   :  { %p3016_p5 = scmp.ne.s32.totalorder %s23_s28, %s3015_s3  ;;  %p3021_p7 = scmp.lt.s32.totalorder %s3015_s3, %s3015_s3 }
  0x2f   :  { %p3022_p8 = por %p3021_p7, %p3020_p6 }
  0x31   :  { %p3023_p9 = pnand %p3022_p8, %p3016_p5 }
  0x33   :  { %3026 = shalt.err (!%p3023_p9)
}
  0x34   :  { %25 = dma.hbm_to_vmem [thread:$0]  %s3275_s0, 384, %s23_s28, [#allocation3]  }
  0x35   :  { %s3027_s18 = scalar_lea.hbm %s3277_s2, 24576 }
  0x36   :  { %p3028_p10 = scmp.ne.s32.totalorder %s3277_s2, %s3027_s18  ;;  %p3031_p11 = scmp.lt.u32.totalorder %s3027_s18, %s3277_s2 }
  0x38   :  { %p3033_p12 = pnand %p3031_p11, %p3028_p10 }
  0x3a   :  { %3036 = shalt.err (!%p3033_p12)
}
  0x3b   :  { %s3037_s1 = scalar_lea.vmem %s3184_s30, 24576  ;;  %p3042_p0 = scmp.lt.s32.totalorder %s3184_s30, %s3184_s30 }
  0x3c   :  { %p3038_p13 = scmp.ne.s32.totalorder %s3184_s30, %s3037_s1  ;;  %p3043_p1 = scmp.lt.s32.totalorder %s3037_s1, %s3037_s1 }
  0x3e   :  { %p3044_p2 = por %p3043_p1, %p3042_p0 }
  0x40   :  { %p3045_p3 = pnand %p3044_p2, %p3038_p13 }
  0x42   :  { %3048 = shalt.err (!%p3045_p3)
}
  0x43   :  { %s3107_s0 = smov 256   ;;  %s3108_s23 = smov 16  }
  0x44   :  { %47 = dma.hbm_to_vmem [thread:$0]  %s3277_s2, 24576, %s3184_s30, [#allocation6], %s3107_s0, %s3107_s0, %s3108_s23  }
  0x45   :  { %s3109_s26 = smov [#allocation10]   ;;  %s3049_s9 = scalar_lea.hbm %s3280_s5, 2048 }
  0x46   :  { %s67_s28 = sshll.u32 %s3109_s26, 4  ;;  %p3050_p4 = scmp.ne.s32.totalorder %s3280_s5, %s3049_s9  ;;  %s68_s28 = int_to_ptr.vmem [resolvable:$true] %s67_s28 }
  0x47   :  { %p3053_p5 = scmp.lt.u32.totalorder %s3049_s9, %s3280_s5 }
  0x49   :  { %p3055_p6 = pnand %p3053_p5, %p3050_p4 }
  0x4b   :  { %3058 = shalt.err (!%p3055_p6)
}
  0x4c   :  { %s3059_s14 = scalar_lea.vmem %s68_s28, 2048  ;;  %p3064_p8 = scmp.lt.s32.totalorder %s68_s28, %s68_s28 }
  0x4d   :  { %p3060_p7 = scmp.ne.s32.totalorder %s68_s28, %s3059_s14  ;;  %p3065_p9 = scmp.lt.s32.totalorder %s3059_s14, %s3059_s14 }
  0x4f   :  { %p3066_p10 = por %p3065_p9, %p3064_p8 }
  0x51   :  { %p3067_p11 = pnand %p3066_p10, %p3060_p7 }
  0x53   :  { %3070 = shalt.err (!%p3067_p11)
}
  0x54   :  { %s3110_s2 = smov 64   ;;  %s3111_s30 = smov 4  }
  0x55   :  { %73 = dma.hbm_to_vmem [thread:$0]  %s3280_s5, 2048, %s68_s28, [#allocation9], %s3110_s2, %s3110_s2, %s3111_s30  }
  0x56   :  { %3093 = dma.done.wait [#allocation3], 384  }
  0x57   :  { %3094 = vsyncadd [#allocation3], 4294966912 }
  0x58   :  { %3095 = dma.done.wait [#allocation6], 24832  }
  0x59   :  { %3096 = vsyncadd [#allocation6], 4294942464 }
  0x5a   :  { %3097 = dma.done.wait [#allocation9], 10240  }
  0x5b   :  { %3098 = vsyncadd [#allocation9], 4294957056  ;;  %v2551_v0 = vld [vmem:[#allocation7 + $0x4] ss:$16 sps:$4 sm:$0xff]   ;;  %v2555_v2 = vld [vmem:[#allocation7] ss:$16 sps:$4 sm:$0xff]  }
  0x5c   :  { %v2553_v1 = vld [vmem:[#allocation7 + $0x204] ss:$16 sps:$4 sm:$0xff]   ;;  %1274 = vmatprep.subr.bf16.mxu1 %v2551_v0  ;;  %v2556_v3 = vld [vmem:[#allocation7 + $0x200] ss:$16 sps:$4 sm:$0xff]   ;;  %v92_v46 = vld [vmem:[#allocation2] sm:$0xff]  ;;  %s3112_s17 = smov [#allocation11]  }
  0x5d   :  { %1315 = vmatprep.subr.bf16.mxu0 %v2553_v1  ;;  %v2557_v4 = vld [vmem:[#allocation7 + $0x24] ss:$16 sps:$4 sm:$0xff]   ;;  %1275 = vmatpush1.bf16.msra.mxu1 %v2555_v2  ;;  %v2561_v6 = vld [vmem:[#allocation7 + $0x20] ss:$16 sps:$4 sm:$0xff]   ;;  %v3227_v47 = vcombine.high %v92_v46, %v92_v46  ;;  %s2203_s18 = sshll.u32 %s3112_s17, 4  ;;  %s2204_s18 = int_to_ptr.vmem [resolvable:$true] %s2203_s18 }
  0x5e   :  { %1316 = vmatpush1.bf16.msra.mxu0 %v2556_v3  ;;  %v2559_v5 = vld [vmem:[#allocation7 + $0x224] ss:$16 sps:$4 sm:$0xff]   ;;  %1276 = vmatprep.subr.bf16.mxu1 %v2557_v4  ;;  %v2562_v7 = vld [vmem:[#allocation7 + $0x220] ss:$16 sps:$4 sm:$0xff]   ;;  %s3071_s19 = scalar_lea.vmem %s2204_s18, 128  ;;  %p3076_p13 = scmp.lt.s32.totalorder %s2204_s18, %s2204_s18 }
  0x5f   :  { %1317 = vmatprep.subr.bf16.mxu0 %v2559_v5  ;;  %v2563_v8 = vld [vmem:[#allocation7 + $0x44] ss:$16 sps:$4 sm:$0xff]   ;;  %v2567_v10 = vld [vmem:[#allocation7 + $0x40] ss:$16 sps:$4 sm:$0xff]   ;;  %1306 = vmatprep.mubr.bf16.mxu1 %v3227_v47  ;;  %v2656_v5 = vld [vmem:[#allocation7 + $0xc] ss:$16 sps:$4 sm:$0xff]   ;;  %p3072_p12 = scmp.ne.s32.totalorder %s2204_s18, %s3071_s19  ;;  %p3077_p0 = scmp.lt.s32.totalorder %s3071_s19, %s3071_s19 }
  0x60   :  { %v2565_v9 = vld [vmem:[#allocation7 + $0x244] ss:$16 sps:$4 sm:$0xff]   ;;  %v2568_v11 = vld [vmem:[#allocation7 + $0x240] ss:$16 sps:$4 sm:$0xff]  }
  0x61   :  { %1277 = vmatpush1.bf16.msra.mxu1 %v2561_v6  ;;  %v2569_v12 = vld [vmem:[#allocation7 + $0x64] ss:$16 sps:$4 sm:$0xff]   ;;  %v2573_v14 = vld [vmem:[#allocation7 + $0x60] ss:$16 sps:$4 sm:$0xff]   ;;  %v3233_v6 = vcombine.low %v92_v46, %v92_v46  ;;  %p3078_p1 = por %p3077_p0, %p3076_p13 }
  0x62   :  { %1318 = vmatpush1.bf16.msra.mxu0 %v2562_v7  ;;  %1278 = vmatprep.subr.bf16.mxu1 %v2563_v8  ;;  %v2571_v13 = vld [vmem:[#allocation7 + $0x264] ss:$16 sps:$4 sm:$0xff]   ;;  %v2574_v15 = vld [vmem:[#allocation7 + $0x260] ss:$16 sps:$4 sm:$0xff]  }
  0x63   :  { %1319 = vmatprep.subr.bf16.mxu0 %v2565_v9  ;;  %v2575_v16 = vld [vmem:[#allocation7 + $0x84] ss:$16 sps:$4 sm:$0xff]   ;;  %v2579_v18 = vld [vmem:[#allocation7 + $0x80] ss:$16 sps:$4 sm:$0xff]   ;;  %v2654_v9 = vld [vmem:[#allocation7 + $0x8] ss:$16 sps:$4 sm:$0xff]   ;;  %p3079_p2 = pnand %p3078_p1, %p3072_p12 }
  0x64   :  { %v2577_v17 = vld [vmem:[#allocation7 + $0x284] ss:$16 sps:$4 sm:$0xff]   ;;  %v2580_v19 = vld [vmem:[#allocation7 + $0x280] ss:$16 sps:$4 sm:$0xff]  }
  0x65   :  { %1279 = vmatpush1.bf16.msra.mxu1 %v2567_v10  ;;  %v2581_v20 = vld [vmem:[#allocation7 + $0xa4] ss:$16 sps:$4 sm:$0xff]   ;;  %v2585_v22 = vld [vmem:[#allocation7 + $0xa0] ss:$16 sps:$4 sm:$0xff]  }
  0x66   :  { %1320 = vmatpush1.bf16.msra.mxu0 %v2568_v11  ;;  %1280 = vmatprep.subr.bf16.mxu1 %v2569_v12  ;;  %v2583_v21 = vld [vmem:[#allocation7 + $0x2a4] ss:$16 sps:$4 sm:$0xff]   ;;  %v2586_v23 = vld [vmem:[#allocation7 + $0x2a0] ss:$16 sps:$4 sm:$0xff]   ;;  %v2662_v11 = vld [vmem:[#allocation7 + $0x2c] ss:$16 sps:$4 sm:$0xff]  }
  0x67   :  { %1321 = vmatprep.subr.bf16.mxu0 %v2571_v13  ;;  %v2587_v24 = vld [vmem:[#allocation7 + $0xc4] ss:$16 sps:$4 sm:$0xff]   ;;  %v2591_v26 = vld [vmem:[#allocation7 + $0xc0] ss:$16 sps:$4 sm:$0xff]   ;;  %v2660_v13 = vld [vmem:[#allocation7 + $0x28] ss:$16 sps:$4 sm:$0xff]  }
  0x68   :  { %v2589_v25 = vld [vmem:[#allocation7 + $0x2c4] ss:$16 sps:$4 sm:$0xff]   ;;  %v2592_v27 = vld [vmem:[#allocation7 + $0x2c0] ss:$16 sps:$4 sm:$0xff]  }
  0x69   :  { %1281 = vmatpush1.bf16.msra.mxu1 %v2573_v14  ;;  %v2593_v28 = vld [vmem:[#allocation7 + $0xe4] ss:$16 sps:$4 sm:$0xff]   ;;  %v2597_v30 = vld [vmem:[#allocation7 + $0xe0] ss:$16 sps:$4 sm:$0xff]  }
  0x6a   :  { %1322 = vmatpush1.bf16.msra.mxu0 %v2574_v15  ;;  %1282 = vmatprep.subr.bf16.mxu1 %v2575_v16  ;;  %v2595_v29 = vld [vmem:[#allocation7 + $0x2e4] ss:$16 sps:$4 sm:$0xff]   ;;  %v2598_v31 = vld [vmem:[#allocation7 + $0x2e0] ss:$16 sps:$4 sm:$0xff]   ;;  %v2668_v15 = vld [vmem:[#allocation7 + $0x4c] ss:$16 sps:$4 sm:$0xff]  }
  0x6b   :  { %1323 = vmatprep.subr.bf16.mxu0 %v2577_v17  ;;  %v2599_v32 = vld [vmem:[#allocation7 + $0x104] ss:$16 sps:$4 sm:$0xff]   ;;  %v2603_v34 = vld [vmem:[#allocation7 + $0x100] ss:$16 sps:$4 sm:$0xff]   ;;  %v2666_v17 = vld [vmem:[#allocation7 + $0x48] ss:$16 sps:$4 sm:$0xff]  }
  0x6c   :  { %v2601_v33 = vld [vmem:[#allocation7 + $0x304] ss:$16 sps:$4 sm:$0xff]   ;;  %v2604_v35 = vld [vmem:[#allocation7 + $0x300] ss:$16 sps:$4 sm:$0xff]  }
  0x6d   :  { %1283 = vmatpush1.bf16.msra.mxu1 %v2579_v18  ;;  %v2605_v36 = vld [vmem:[#allocation7 + $0x124] ss:$16 sps:$4 sm:$0xff]   ;;  %v2609_v38 = vld [vmem:[#allocation7 + $0x120] ss:$16 sps:$4 sm:$0xff]  }
  0x6e   :  { %1324 = vmatpush1.bf16.msra.mxu0 %v2580_v19  ;;  %1284 = vmatprep.subr.bf16.mxu1 %v2581_v20  ;;  %v2607_v37 = vld [vmem:[#allocation7 + $0x324] ss:$16 sps:$4 sm:$0xff]   ;;  %v2610_v39 = vld [vmem:[#allocation7 + $0x320] ss:$16 sps:$4 sm:$0xff]   ;;  %v2674_v19 = vld [vmem:[#allocation7 + $0x6c] ss:$16 sps:$4 sm:$0xff]  }
  0x6f   :  { %1325 = vmatprep.subr.bf16.mxu0 %v2583_v21  ;;  %v2611_v40 = vld [vmem:[#allocation7 + $0x144] ss:$16 sps:$4 sm:$0xff]   ;;  %v2615_v42 = vld [vmem:[#allocation7 + $0x140] ss:$16 sps:$4 sm:$0xff]   ;;  %v2672_v21 = vld [vmem:[#allocation7 + $0x68] ss:$16 sps:$4 sm:$0xff]  }
  0x70   :  { %v2613_v41 = vld [vmem:[#allocation7 + $0x344] ss:$16 sps:$4 sm:$0xff]   ;;  %v2616_v43 = vld [vmem:[#allocation7 + $0x340] ss:$16 sps:$4 sm:$0xff]  }
  0x71   :  { %1285 = vmatpush1.bf16.msra.mxu1 %v2585_v22  ;;  %v2617_v44 = vld [vmem:[#allocation7 + $0x164] ss:$16 sps:$4 sm:$0xff]   ;;  %v2621_v49 = vld [vmem:[#allocation7 + $0x160] ss:$16 sps:$4 sm:$0xff]  }
  0x72   :  { %1326 = vmatpush1.bf16.msra.mxu0 %v2586_v23  ;;  %1286 = vmatprep.subr.bf16.mxu1 %v2587_v24  ;;  %v2619_v45 = vld [vmem:[#allocation7 + $0x364] ss:$16 sps:$4 sm:$0xff]   ;;  %v2622_v50 = vld [vmem:[#allocation7 + $0x360] ss:$16 sps:$4 sm:$0xff]   ;;  %v2680_v23 = vld [vmem:[#allocation7 + $0x8c] ss:$16 sps:$4 sm:$0xff]  }
  0x73   :  { %1327 = vmatprep.subr.bf16.mxu0 %v2589_v25  ;;  %v93_v48 = vld [vmem:[#allocation2 + $0x8] sm:$0xff]  ;;  %v2678_v25 = vld [vmem:[#allocation7 + $0x88] ss:$16 sps:$4 sm:$0xff]  }
  0x74   :  { %v3229_v51 = vcombine.high %v93_v48, %v93_v48  ;;  %v2623_v52 = vld [vmem:[#allocation7 + $0x184] ss:$16 sps:$4 sm:$0xff]   ;;  %v2627_v54 = vld [vmem:[#allocation7 + $0x180] ss:$16 sps:$4 sm:$0xff]   ;;  %v3235_v7 = vcombine.low %v93_v48, %v93_v48 }
  0x75   :  { %1287 = vmatpush1.bf16.msra.mxu1 %v2591_v26  ;;  %v2625_v53 = vld [vmem:[#allocation7 + $0x384] ss:$16 sps:$4 sm:$0xff]   ;;  %v2628_v55 = vld [vmem:[#allocation7 + $0x380] ss:$16 sps:$4 sm:$0xff]  }
  0x76   :  { %1328 = vmatpush1.bf16.msra.mxu0 %v2592_v27  ;;  %1288 = vmatprep.subr.bf16.mxu1 %v2593_v28  ;;  %v2629_v56 = vld [vmem:[#allocation7 + $0x1a4] ss:$16 sps:$4 sm:$0xff]   ;;  %v2633_v58 = vld [vmem:[#allocation7 + $0x1a0] ss:$16 sps:$4 sm:$0xff]   ;;  %v2686_v27 = vld [vmem:[#allocation7 + $0xac] ss:$16 sps:$4 sm:$0xff]  }
  0x77   :  { %1329 = vmatprep.subr.bf16.mxu0 %v2595_v29  ;;  %1347 = vmatprep.mubr.bf16.mxu0 %v3229_v51  ;;  %v2631_v57 = vld [vmem:[#allocation7 + $0x3a4] ss:$16 sps:$4 sm:$0xff]   ;;  %v2634_v59 = vld [vmem:[#allocation7 + $0x3a0] ss:$16 sps:$4 sm:$0xff]   ;;  %v2684_v29 = vld [vmem:[#allocation7 + $0xa8] ss:$16 sps:$4 sm:$0xff]  }
  0x78   :  { %v2635_v60 = vld [vmem:[#allocation7 + $0x1c4] ss:$16 sps:$4 sm:$0xff]   ;;  %v2639_v62 = vld [vmem:[#allocation7 + $0x1c0] ss:$16 sps:$4 sm:$0xff]  }
  0x79   :  { %1289 = vmatpush1.bf16.msra.mxu1 %v2597_v30  ;;  %v2637_v61 = vld [vmem:[#allocation7 + $0x3c4] ss:$16 sps:$4 sm:$0xff]   ;;  %v2640_v63 = vld [vmem:[#allocation7 + $0x3c0] ss:$16 sps:$4 sm:$0xff]  }
  0x7a   :  { %1330 = vmatpush1.bf16.msra.mxu0 %v2598_v31  ;;  %1290 = vmatprep.subr.bf16.mxu1 %v2599_v32  ;;  %v2641_v0 = vld [vmem:[#allocation7 + $0x1e4] ss:$16 sps:$4 sm:$0xff]   ;;  %v2645_v2 = vld [vmem:[#allocation7 + $0x1e0] ss:$16 sps:$4 sm:$0xff]   ;;  %v2692_v31 = vld [vmem:[#allocation7 + $0xcc] ss:$16 sps:$4 sm:$0xff]  }
  0x7b   :  { %1331 = vmatprep.subr.bf16.mxu0 %v2601_v33  ;;  %v2643_v1 = vld [vmem:[#allocation7 + $0x3e4] ss:$16 sps:$4 sm:$0xff]   ;;  %v2646_v3 = vld [vmem:[#allocation7 + $0x3e0] ss:$16 sps:$4 sm:$0xff]   ;;  %v3240_v32 = vld [vmem:[#allocation2 + $0x10] sm:$0xff] }
  0x7c   :  { %v2653_v4 = vld [vmem:[#allocation7 + $0x404] ss:$16 sps:$4 sm:$0xff]   ;;  %v2651_v8 = vld [vmem:[#allocation7 + $0x400] ss:$16 sps:$4 sm:$0xff]  }
  0x7d   :  { %1291 = vmatpush1.bf16.msra.mxu1 %v2603_v34  ;;  %v2659_v10 = vld [vmem:[#allocation7 + $0x424] ss:$16 sps:$4 sm:$0xff]   ;;  %v2657_v12 = vld [vmem:[#allocation7 + $0x420] ss:$16 sps:$4 sm:$0xff]   ;;  %v3244_v34 = vcombine.high %v3240_v32, %v3240_v32 }
  0x7e   :  { %1332 = vmatpush1.bf16.msra.mxu0 %v2604_v35  ;;  %1292 = vmatprep.subr.bf16.mxu1 %v2605_v36  ;;  %v2665_v14 = vld [vmem:[#allocation7 + $0x444] ss:$16 sps:$4 sm:$0xff]   ;;  %v2663_v16 = vld [vmem:[#allocation7 + $0x440] ss:$16 sps:$4 sm:$0xff]   ;;  %v2690_v35 = vld [vmem:[#allocation7 + $0xc8] ss:$16 sps:$4 sm:$0xff]  }
  0x7f   :  { %1333 = vmatprep.subr.bf16.mxu0 %v2607_v37  ;;  %v2671_v18 = vld [vmem:[#allocation7 + $0x464] ss:$16 sps:$4 sm:$0xff]   ;;  %v2669_v20 = vld [vmem:[#allocation7 + $0x460] ss:$16 sps:$4 sm:$0xff]   ;;  %v2698_v37 = vld [vmem:[#allocation7 + $0xec] ss:$16 sps:$4 sm:$0xff]  }
  0x80   :  { %v2677_v22 = vld [vmem:[#allocation7 + $0x484] ss:$16 sps:$4 sm:$0xff]   ;;  %v2675_v24 = vld [vmem:[#allocation7 + $0x480] ss:$16 sps:$4 sm:$0xff]  }
  0x81   :  { %1293 = vmatpush1.bf16.msra.mxu1 %v2609_v38  ;;  %v2683_v26 = vld [vmem:[#allocation7 + $0x4a4] ss:$16 sps:$4 sm:$0xff]   ;;  %v2681_v28 = vld [vmem:[#allocation7 + $0x4a0] ss:$16 sps:$4 sm:$0xff]  }
  0x82   :  { %1334 = vmatpush1.bf16.msra.mxu0 %v2610_v39  ;;  %1294 = vmatprep.subr.bf16.mxu1 %v2611_v40  ;;  %v2689_v30 = vld [vmem:[#allocation7 + $0x4c4] ss:$16 sps:$4 sm:$0xff]   ;;  %v2687_v33 = vld [vmem:[#allocation7 + $0x4c0] ss:$16 sps:$4 sm:$0xff]   ;;  %v2696_v39 = vld [vmem:[#allocation7 + $0xe8] ss:$16 sps:$4 sm:$0xff]  }
  0x83   :  { %1335 = vmatprep.subr.bf16.mxu0 %v2613_v41  ;;  %v2695_v36 = vld [vmem:[#allocation7 + $0x4e4] ss:$16 sps:$4 sm:$0xff]   ;;  %v2693_v38 = vld [vmem:[#allocation7 + $0x4e0] ss:$16 sps:$4 sm:$0xff]   ;;  %v2704_v41 = vld [vmem:[#allocation7 + $0x10c] ss:$16 sps:$4 sm:$0xff]  }
  0x84   :  { %v2701_v40 = vld [vmem:[#allocation7 + $0x504] ss:$16 sps:$4 sm:$0xff]   ;;  %v2705_v46 = vld [vmem:[#allocation7 + $0x520] ss:$16 sps:$4 sm:$0xff]  }
  0x85   :  { %1295 = vmatpush1.bf16.msra.mxu1 %v2615_v42  ;;  %v2699_v42 = vld [vmem:[#allocation7 + $0x500] ss:$16 sps:$4 sm:$0xff]   ;;  %v2713_v48 = vld [vmem:[#allocation7 + $0x544] ss:$16 sps:$4 sm:$0xff]  }
  0x86   :  { %1336 = vmatpush1.bf16.msra.mxu0 %v2616_v43  ;;  %1296 = vmatprep.subr.bf16.mxu1 %v2617_v44  ;;  %v2702_v43 = vld [vmem:[#allocation7 + $0x108] ss:$16 sps:$4 sm:$0xff]   ;;  %v2707_v44 = vld [vmem:[#allocation7 + $0x524] ss:$16 sps:$4 sm:$0xff]  }
  0x87   :  { %1337 = vmatprep.subr.bf16.mxu0 %v2619_v45  ;;  %v2710_v45 = vld [vmem:[#allocation7 + $0x12c] ss:$16 sps:$4 sm:$0xff]  }
  0x89   :  { %1297 = vmatpush1.bf16.msra.mxu1 %v2621_v49  ;;  %v2716_v49 = vld [vmem:[#allocation7 + $0x14c] ss:$16 sps:$4 sm:$0xff]  }
  0x8a   :  { %1338 = vmatpush1.bf16.msra.mxu0 %v2622_v50  ;;  %1298 = vmatprep.subr.bf16.mxu1 %v2623_v52  ;;  %v2711_v50 = vld [vmem:[#allocation7 + $0x540] ss:$16 sps:$4 sm:$0xff]   ;;  %v2714_v52 = vld [vmem:[#allocation7 + $0x148] ss:$16 sps:$4 sm:$0xff]  }
  0x8b   :  { %1339 = vmatprep.subr.bf16.mxu0 %v2625_v53  ;;  %v2719_v53 = vld [vmem:[#allocation7 + $0x564] ss:$16 sps:$4 sm:$0xff]  }
  0x8d   :  { %1299 = vmatpush1.bf16.msra.mxu1 %v2627_v54  ;;  %v2722_v54 = vld [vmem:[#allocation7 + $0x16c] ss:$16 sps:$4 sm:$0xff]  }
  0x8e   :  { %1340 = vmatpush1.bf16.msra.mxu0 %v2628_v55  ;;  %1300 = vmatprep.subr.bf16.mxu1 %v2629_v56  ;;  %v2717_v55 = vld [vmem:[#allocation7 + $0x560] ss:$16 sps:$4 sm:$0xff]   ;;  %v2720_v56 = vld [vmem:[#allocation7 + $0x168] ss:$16 sps:$4 sm:$0xff]  }
  0x8f   :  { %1341 = vmatprep.subr.bf16.mxu0 %v2631_v57  ;;  %v2725_v57 = vld [vmem:[#allocation7 + $0x584] ss:$16 sps:$4 sm:$0xff]  }
  0x91   :  { %1301 = vmatpush1.bf16.msra.mxu1 %v2633_v58  ;;  %v2728_v58 = vld [vmem:[#allocation7 + $0x18c] ss:$16 sps:$4 sm:$0xff]  }
  0x92   :  { %1342 = vmatpush1.bf16.msra.mxu0 %v2634_v59  ;;  %1302 = vmatprep.subr.bf16.mxu1 %v2635_v60  ;;  %v2723_v59 = vld [vmem:[#allocation7 + $0x580] ss:$16 sps:$4 sm:$0xff]   ;;  %v2726_v60 = vld [vmem:[#allocation7 + $0x188] ss:$16 sps:$4 sm:$0xff]  }
  0x93   :  { %1343 = vmatprep.subr.bf16.mxu0 %v2637_v61  ;;  %v2731_v61 = vld [vmem:[#allocation7 + $0x5a4] ss:$16 sps:$4 sm:$0xff]  }
  0x95   :  { %1303 = vmatpush1.bf16.msra.mxu1 %v2639_v62  ;;  %v2734_v62 = vld [vmem:[#allocation7 + $0x1ac] ss:$16 sps:$4 sm:$0xff]  }
  0x96   :  { %1344 = vmatpush1.bf16.msra.mxu0 %v2640_v63  ;;  %1304 = vmatprep.subr.bf16.mxu1 %v2641_v0  ;;  %v2729_v63 = vld [vmem:[#allocation7 + $0x5a0] ss:$16 sps:$4 sm:$0xff]   ;;  %v2732_v0 = vld [vmem:[#allocation7 + $0x1a8] ss:$16 sps:$4 sm:$0xff]  }
  0x97   :  { %1345 = vmatprep.subr.bf16.mxu0 %v2643_v1  ;;  %v2737_v1 = vld [vmem:[#allocation7 + $0x5c4] ss:$16 sps:$4 sm:$0xff]  }
  0x99   :  { %1305 = vmatpush1.bf16.msra.mxu1 %v2645_v2  ;;  %v2740_v2 = vld [vmem:[#allocation7 + $0x1cc] ss:$16 sps:$4 sm:$0xff]  }
  0x9a   :  { %1346 = vmatpush1.bf16.msra.mxu0 %v2646_v3  ;;  %1397 = vmatprep.subr.bf16.mxu1 %v2656_v5  ;;  %v2735_v3 = vld [vmem:[#allocation7 + $0x5c0] ss:$16 sps:$4 sm:$0xff]   ;;  %v2743_v5 = vld [vmem:[#allocation7 + $0x5e4] ss:$16 sps:$4 sm:$0xff]  }
  0x9b   :  { %1356 = vmatprep.subr.bf16.mxu0 %v2653_v4  ;;  %v2738_v4 = vld [vmem:[#allocation7 + $0x1c8] ss:$16 sps:$4 sm:$0xff]  }
  0x9c   :  { %1307 = vmatmul.mubr.bf16.vlgmr.msra.gmra.mrb[0].mxu1 %v3233_v6 }
  0x9d   :  { %1348 = vmatmul.mubr.bf16.vlgmr.msra.gmra.mrb[0].mxu0 %v3235_v7  ;;  %1398 = vmatpush1.bf16.msra.mxu1 %v2654_v9  ;;  %v2741_v9 = vld [vmem:[#allocation7 + $0x5e0] ss:$16 sps:$4 sm:$0xff]  }
  0x9e   :  { %1357 = vmatpush1.bf16.msra.mxu0 %v2651_v8  ;;  %1399 = vmatprep.subr.bf16.mxu1 %v2662_v11  ;;  %v2746_v8 = vld [vmem:[#allocation7 + $0x1ec] ss:$16 sps:$4 sm:$0xff]  }
  0x9f   :  { %1358 = vmatprep.subr.bf16.mxu0 %v2659_v10  ;;  %1429 = vmatprep.mubr.bf16.mxu1 %v3227_v47  ;;  %v2708_v47 = vld [vmem:[#allocation7 + $0x128] ss:$16 sps:$4 sm:$0xff]   ;;  %v2751_v11 = vld [vmem:[#allocation7 + $0x20c] ss:$16 sps:$4 sm:$0xff]  }
  0xa0   :  { %1388 = vmatprep.mubr.bf16.mxu0 %v3244_v34  ;;  %v2744_v10 = vld [vmem:[#allocation7 + $0x1e8] ss:$16 sps:$4 sm:$0xff]  }
  0xa1   :  { %1400 = vmatpush1.bf16.msra.mxu1 %v2660_v13  ;;  %v2749_v13 = vld [vmem:[#allocation7 + $0x208] ss:$16 sps:$4 sm:$0xff]  }
  0xa2   :  { %1359 = vmatpush1.bf16.msra.mxu0 %v2657_v12  ;;  %1401 = vmatprep.subr.bf16.mxu1 %v2668_v15  ;;  %v3249_v12 = vcombine.low %v3240_v32, %v3240_v32  ;;  %v2752_v15 = vld [vmem:[#allocation7 + $0x228] ss:$16 sps:$4 sm:$0xff]  }
  0xa3   :  { %1360 = vmatprep.subr.bf16.mxu0 %v2665_v14  ;;  %v2754_v14 = vld [vmem:[#allocation7 + $0x22c] ss:$16 sps:$4 sm:$0xff]   ;;  %v2773_v32 = vld [vmem:[#allocation7 + $0x308] ss:$16 sps:$4 sm:$0xff]  }
  0xa5   :  { %1402 = vmatpush1.bf16.msra.mxu1 %v2666_v17  ;;  %v2755_v17 = vld [vmem:[#allocation7 + $0x248] ss:$16 sps:$4 sm:$0xff]  }
  0xa6   :  { %1361 = vmatpush1.bf16.msra.mxu0 %v2663_v16  ;;  %1403 = vmatprep.subr.bf16.mxu1 %v2674_v19  ;;  %v2757_v16 = vld [vmem:[#allocation7 + $0x24c] ss:$16 sps:$4 sm:$0xff]   ;;  %v2758_v19 = vld [vmem:[#allocation7 + $0x268] ss:$16 sps:$4 sm:$0xff]  }
  0xa7   :  { %1362 = vmatprep.subr.bf16.mxu0 %v2671_v18  ;;  %v2760_v18 = vld [vmem:[#allocation7 + $0x26c] ss:$16 sps:$4 sm:$0xff]  }
  0xa9   :  { %1404 = vmatpush1.bf16.msra.mxu1 %v2672_v21  ;;  %v2761_v21 = vld [vmem:[#allocation7 + $0x288] ss:$16 sps:$4 sm:$0xff]  }
  0xaa   :  { %1363 = vmatpush1.bf16.msra.mxu0 %v2669_v20  ;;  %1405 = vmatprep.subr.bf16.mxu1 %v2680_v23  ;;  %v2763_v20 = vld [vmem:[#allocation7 + $0x28c] ss:$16 sps:$4 sm:$0xff]   ;;  %v2764_v23 = vld [vmem:[#allocation7 + $0x2a8] ss:$16 sps:$4 sm:$0xff]  }
  0xab   :  { %1364 = vmatprep.subr.bf16.mxu0 %v2677_v22  ;;  %v2766_v22 = vld [vmem:[#allocation7 + $0x2ac] ss:$16 sps:$4 sm:$0xff]  }
  0xad   :  { %1406 = vmatpush1.bf16.msra.mxu1 %v2678_v25  ;;  %v2845_v25 = vld [vmem:[#allocation8] ss:$8 sps:$4 sm:$0xff]  }
  0xae   :  { %1365 = vmatpush1.bf16.msra.mxu0 %v2675_v24  ;;  %1407 = vmatprep.subr.bf16.mxu1 %v2686_v27  ;;  %v2769_v24 = vld [vmem:[#allocation7 + $0x2cc] ss:$16 sps:$4 sm:$0xff]  }
  0xaf   :  { %1366 = vmatprep.subr.bf16.mxu0 %v2683_v26  ;;  %v2847_v26 = vld [vmem:[#allocation8 + $0x4] ss:$8 sps:$4 sm:$0xff]   ;;  %v2850_v27 = vld [vmem:[#allocation8 + $0x14] ss:$8 sps:$4 sm:$0xff]  }
  0xb1   :  { %1408 = vmatpush1.bf16.msra.mxu1 %v2684_v29  ;;  %v2848_v29 = vld [vmem:[#allocation8 + $0x10] ss:$8 sps:$4 sm:$0xff]  }
  0xb2   :  { %1367 = vmatpush1.bf16.msra.mxu0 %v2681_v28  ;;  %1409 = vmatprep.subr.bf16.mxu1 %v2692_v31  ;;  %v2770_v28 = vld [vmem:[#allocation7 + $0x2e8] ss:$16 sps:$4 sm:$0xff]   ;;  %v2853_v31 = vld [vmem:[#allocation8 + $0x24] ss:$8 sps:$4 sm:$0xff]  }
  0xb3   :  { %1368 = vmatprep.subr.bf16.mxu0 %v2689_v30  ;;  %v2775_v30 = vld [vmem:[#allocation7 + $0x30c] ss:$16 sps:$4 sm:$0xff]  }
  0xb5   :  { %1410 = vmatpush1.bf16.msra.mxu1 %v2690_v35  ;;  %v2778_v35 = vld [vmem:[#allocation7 + $0x32c] ss:$16 sps:$4 sm:$0xff]  }
  0xb6   :  { %1369 = vmatpush1.bf16.msra.mxu0 %v2687_v33  ;;  %1411 = vmatprep.subr.bf16.mxu1 %v2698_v37  ;;  %v2851_v33 = vld [vmem:[#allocation8 + $0x20] ss:$8 sps:$4 sm:$0xff]  }
  0xb7   :  { %1370 = vmatprep.subr.bf16.mxu0 %v2695_v36  ;;  %v2856_v36 = vld [vmem:[#allocation8 + $0x34] ss:$8 sps:$4 sm:$0xff]   ;;  %v2776_v37 = vld [vmem:[#allocation7 + $0x328] ss:$16 sps:$4 sm:$0xff]  }
  0xb9   :  { %1412 = vmatpush1.bf16.msra.mxu1 %v2696_v39  ;;  %v2781_v39 = vld [vmem:[#allocation7 + $0x34c] ss:$16 sps:$4 sm:$0xff]  }
  0xba   :  { %1371 = vmatpush1.bf16.msra.mxu0 %v2693_v38  ;;  %1413 = vmatprep.subr.bf16.mxu1 %v2704_v41  ;;  %v2854_v38 = vld [vmem:[#allocation8 + $0x30] ss:$8 sps:$4 sm:$0xff]  }
  0xbb   :  { %1372 = vmatprep.subr.bf16.mxu0 %v2701_v40  ;;  %v2859_v40 = vld [vmem:[#allocation8 + $0x44] ss:$8 sps:$4 sm:$0xff]   ;;  %v2779_v41 = vld [vmem:[#allocation7 + $0x348] ss:$16 sps:$4 sm:$0xff]  }
  0xbd   :  { %1414 = vmatpush1.bf16.msra.mxu1 %v2702_v43  ;;  %v2784_v43 = vld [vmem:[#allocation7 + $0x36c] ss:$16 sps:$4 sm:$0xff]  }
  0xbe   :  { %1373 = vmatpush1.bf16.msra.mxu0 %v2699_v42  ;;  %1415 = vmatprep.subr.bf16.mxu1 %v2710_v45  ;;  %v2857_v42 = vld [vmem:[#allocation8 + $0x40] ss:$8 sps:$4 sm:$0xff]  }
  0xbf   :  { %1374 = vmatprep.subr.bf16.mxu0 %v2707_v44  ;;  %v2862_v44 = vld [vmem:[#allocation8 + $0x54] ss:$8 sps:$4 sm:$0xff]   ;;  %v2782_v45 = vld [vmem:[#allocation7 + $0x368] ss:$16 sps:$4 sm:$0xff]  }
  0xc1   :  { %1416 = vmatpush1.bf16.msra.mxu1 %v2708_v47  ;;  %v2787_v47 = vld [vmem:[#allocation7 + $0x38c] ss:$16 sps:$4 sm:$0xff]  }
  0xc2   :  { %1375 = vmatpush1.bf16.msra.mxu0 %v2705_v46  ;;  %1417 = vmatprep.subr.bf16.mxu1 %v2716_v49  ;;  %v2860_v46 = vld [vmem:[#allocation8 + $0x50] ss:$8 sps:$4 sm:$0xff]  }
  0xc3   :  { %1376 = vmatprep.subr.bf16.mxu0 %v2713_v48  ;;  %v2865_v48 = vld [vmem:[#allocation8 + $0x64] ss:$8 sps:$4 sm:$0xff]   ;;  %v2785_v49 = vld [vmem:[#allocation7 + $0x388] ss:$16 sps:$4 sm:$0xff]  }
  0xc5   :  { %1418 = vmatpush1.bf16.msra.mxu1 %v2714_v52  ;;  %v2790_v52 = vld [vmem:[#allocation7 + $0x3ac] ss:$16 sps:$4 sm:$0xff]  }
  0xc6   :  { %1377 = vmatpush1.bf16.msra.mxu0 %v2711_v50  ;;  %1419 = vmatprep.subr.bf16.mxu1 %v2722_v54  ;;  %v2863_v50 = vld [vmem:[#allocation8 + $0x60] ss:$8 sps:$4 sm:$0xff]  }
  0xc7   :  { %1378 = vmatprep.subr.bf16.mxu0 %v2719_v53  ;;  %v2868_v53 = vld [vmem:[#allocation8 + $0x74] ss:$8 sps:$4 sm:$0xff]   ;;  %v2788_v54 = vld [vmem:[#allocation7 + $0x3a8] ss:$16 sps:$4 sm:$0xff]  }
  0xc9   :  { %1420 = vmatpush1.bf16.msra.mxu1 %v2720_v56  ;;  %v2793_v56 = vld [vmem:[#allocation7 + $0x3cc] ss:$16 sps:$4 sm:$0xff]  }
  0xca   :  { %1379 = vmatpush1.bf16.msra.mxu0 %v2717_v55  ;;  %1421 = vmatprep.subr.bf16.mxu1 %v2728_v58  ;;  %v2866_v55 = vld [vmem:[#allocation8 + $0x70] ss:$8 sps:$4 sm:$0xff]  }
  0xcb   :  { %1380 = vmatprep.subr.bf16.mxu0 %v2725_v57  ;;  %v2871_v57 = vld [vmem:[#allocation8 + $0x84] ss:$8 sps:$4 sm:$0xff]   ;;  %v2791_v58 = vld [vmem:[#allocation7 + $0x3c8] ss:$16 sps:$4 sm:$0xff]  }
  0xcd   :  { %1422 = vmatpush1.bf16.msra.mxu1 %v2726_v60  ;;  %v2796_v60 = vld [vmem:[#allocation7 + $0x3ec] ss:$16 sps:$4 sm:$0xff]  }
  0xce   :  { %1381 = vmatpush1.bf16.msra.mxu0 %v2723_v59  ;;  %1423 = vmatprep.subr.bf16.mxu1 %v2734_v62  ;;  %v2869_v59 = vld [vmem:[#allocation8 + $0x80] ss:$8 sps:$4 sm:$0xff]  }
  0xcf   :  { %1382 = vmatprep.subr.bf16.mxu0 %v2731_v61  ;;  %v2874_v61 = vld [vmem:[#allocation8 + $0x94] ss:$8 sps:$4 sm:$0xff]   ;;  %v2794_v62 = vld [vmem:[#allocation7 + $0x3e8] ss:$16 sps:$4 sm:$0xff]  }
  0xd1   :  { %1424 = vmatpush1.bf16.msra.mxu1 %v2732_v0  ;;  %v2799_v0 = vld [vmem:[#allocation7 + $0x40c] ss:$16 sps:$4 sm:$0xff]  }
  0xd2   :  { %1383 = vmatpush1.bf16.msra.mxu0 %v2729_v63  ;;  %1425 = vmatprep.subr.bf16.mxu1 %v2740_v2  ;;  %v2872_v63 = vld [vmem:[#allocation8 + $0x90] ss:$8 sps:$4 sm:$0xff]  }
  0xd3   :  { %1384 = vmatprep.subr.bf16.mxu0 %v2737_v1  ;;  %v2877_v1 = vld [vmem:[#allocation8 + $0xa4] ss:$8 sps:$4 sm:$0xff]   ;;  %v2797_v2 = vld [vmem:[#allocation7 + $0x408] ss:$16 sps:$4 sm:$0xff]  }
  0xd5   :  { %1426 = vmatpush1.bf16.msra.mxu1 %v2738_v4  ;;  %v2875_v4 = vld [vmem:[#allocation8 + $0xa0] ss:$8 sps:$4 sm:$0xff]  }
  0xd6   :  { %1385 = vmatpush1.bf16.msra.mxu0 %v2735_v3  ;;  %1427 = vmatprep.subr.bf16.mxu1 %v2746_v8  ;;  %v2802_v3 = vld [vmem:[#allocation7 + $0x42c] ss:$16 sps:$4 sm:$0xff]   ;;  %v2800_v8 = vld [vmem:[#allocation7 + $0x428] ss:$16 sps:$4 sm:$0xff]  }
  0xd7   :  { %1386 = vmatprep.subr.bf16.mxu0 %v2743_v5  ;;  %v2880_v5 = vld [vmem:[#allocation8 + $0xb4] ss:$8 sps:$4 sm:$0xff]  }
  0xd9   :  { %1428 = vmatpush1.bf16.msra.mxu1 %v2744_v10  ;;  %v2878_v10 = vld [vmem:[#allocation8 + $0xb0] ss:$8 sps:$4 sm:$0xff]  }
  0xda   :  { %1387 = vmatpush1.bf16.msra.mxu0 %v2741_v9  ;;  %1438 = vmatprep.subr.bf16.mxu1 %v2751_v11  ;;  %v2805_v9 = vld [vmem:[#allocation7 + $0x44c] ss:$16 sps:$4 sm:$0xff]  }
  0xdb   :  { %1928 = vmatprep.subr.bf16.mxu0 %v2847_v26  ;;  %v2883_v11 = vld [vmem:[#allocation8 + $0xc4] ss:$8 sps:$4 sm:$0xff]   ;;  %v2890_v26 = vld [vmem:[#allocation8 + $0xf0] ss:$8 sps:$4 sm:$0xff]  }
  0xdc   :  { %1430 = vmatmul.mubr.bf16.vlgmr.msra.gmra.mrb[4].mxu1 %v3233_v6  ;;  %v2767_v6 = vld [vmem:[#allocation7 + $0x2c8] ss:$16 sps:$4 sm:$0xff]  }
  0xdd   :  { %1389 = vmatmul.mubr.bf16.vlgmr.msra.gmra.mrb[0].mxu0 %v3249_v12  ;;  %1439 = vmatpush1.bf16.msra.mxu1 %v2749_v13  ;;  %v2803_v13 = vld [vmem:[#allocation7 + $0x448] ss:$16 sps:$4 sm:$0xff]  }
  0xde   :  { %1470 = vmatprep.mubr.bf16.mxu1 %v3229_v51  ;;  %1440 = vmatprep.subr.bf16.mxu1 %v2754_v14  ;;  %v2772_v51 = vld [vmem:[#allocation7 + $0x2ec] ss:$16 sps:$4 sm:$0xff]  }
  0xdf   :  { %1929 = vmatpush1.bf16.msra.mxu0 %v2845_v25  ;;  %v2808_v14 = vld [vmem:[#allocation7 + $0x46c] ss:$16 sps:$4 sm:$0xff]   ;;  %v2818_v25 = vld [vmem:[#allocation7 + $0x4e8] ss:$16 sps:$4 sm:$0xff]  }
  0xe0   :  { %1930 = vmatprep.subr.bf16.mxu0 %v2850_v27  ;;  %v2823_v27 = vld [vmem:[#allocation7 + $0x50c] ss:$16 sps:$4 sm:$0xff]  }
  0xe1   :  { %1441 = vmatpush1.bf16.msra.mxu1 %v2752_v15  ;;  %v2881_v15 = vld [vmem:[#allocation8 + $0xc0] ss:$8 sps:$4 sm:$0xff]  }
  0xe2   :  { %1442 = vmatprep.subr.bf16.mxu1 %v2757_v16  ;;  %v2886_v16 = vld [vmem:[#allocation8 + $0xd4] ss:$8 sps:$4 sm:$0xff]  }
  0xe3   :  { %1931 = vmatpush1.bf16.msra.mxu0 %v2848_v29  ;;  %v2826_v29 = vld [vmem:[#allocation7 + $0x52c] ss:$16 sps:$4 sm:$0xff]  }
  0xe4   :  { %1932 = vmatprep.subr.bf16.mxu0 %v2853_v31  ;;  %v2824_v31 = vld [vmem:[#allocation7 + $0x528] ss:$16 sps:$4 sm:$0xff]  }
  0xe5   :  { %1443 = vmatpush1.bf16.msra.mxu1 %v2755_v17  ;;  %v2811_v17 = vld [vmem:[#allocation7 + $0x48c] ss:$16 sps:$4 sm:$0xff]  }
  0xe6   :  { %1444 = vmatprep.subr.bf16.mxu1 %v2760_v18  ;;  %v2809_v18 = vld [vmem:[#allocation7 + $0x488] ss:$16 sps:$4 sm:$0xff]  }
  0xe7   :  { %1933 = vmatpush1.bf16.msra.mxu0 %v2851_v33  ;;  %v2827_v33 = vld [vmem:[#allocation7 + $0x548] ss:$16 sps:$4 sm:$0xff]  }
  0xe8   :  { %1934 = vmatprep.subr.bf16.mxu0 %v2856_v36  ;;  %v2830_v36 = vld [vmem:[#allocation7 + $0x568] ss:$16 sps:$4 sm:$0xff]  }
  0xe9   :  { %1445 = vmatpush1.bf16.msra.mxu1 %v2758_v19  ;;  %v2814_v19 = vld [vmem:[#allocation7 + $0x4ac] ss:$16 sps:$4 sm:$0xff]  }
  0xea   :  { %1446 = vmatprep.subr.bf16.mxu1 %v2763_v20  ;;  %v2812_v20 = vld [vmem:[#allocation7 + $0x4a8] ss:$16 sps:$4 sm:$0xff]  }
  0xeb   :  { %1935 = vmatpush1.bf16.msra.mxu0 %v2854_v38  ;;  %v2833_v38 = vld [vmem:[#allocation7 + $0x588] ss:$16 sps:$4 sm:$0xff]  }
  0xec   :  { %1936 = vmatprep.subr.bf16.mxu0 %v2859_v40  ;;  %v2836_v40 = vld [vmem:[#allocation7 + $0x5a8] ss:$16 sps:$4 sm:$0xff]  }
  0xed   :  { %1447 = vmatpush1.bf16.msra.mxu1 %v2761_v21  ;;  %v2817_v21 = vld [vmem:[#allocation7 + $0x4cc] ss:$16 sps:$4 sm:$0xff]  }
  0xee   :  { %1448 = vmatprep.subr.bf16.mxu1 %v2766_v22  ;;  %v2889_v22 = vld [vmem:[#allocation8 + $0xe4] ss:$8 sps:$4 sm:$0xff]  }
  0xef   :  { %1937 = vmatpush1.bf16.msra.mxu0 %v2857_v42  ;;  %v2839_v42 = vld [vmem:[#allocation7 + $0x5c8] ss:$16 sps:$4 sm:$0xff]  }
  0xf0   :  { %1938 = vmatprep.subr.bf16.mxu0 %v2862_v44  ;;  %v2842_v44 = vld [vmem:[#allocation7 + $0x5e8] ss:$16 sps:$4 sm:$0xff]  }
  0xf1   :  { %1449 = vmatpush1.bf16.msra.mxu1 %v2764_v23  ;;  %v2815_v23 = vld [vmem:[#allocation7 + $0x4c8] ss:$16 sps:$4 sm:$0xff]  }
  0xf2   :  { %1450 = vmatprep.subr.bf16.mxu1 %v2769_v24  ;;  %v2887_v24 = vld [vmem:[#allocation8 + $0xe0] ss:$8 sps:$4 sm:$0xff]  }
  0xf3   :  { %1939 = vmatpush1.bf16.msra.mxu0 %v2860_v46 }
  0xf4   :  { %1940 = vmatprep.subr.bf16.mxu0 %v2865_v48 }
  0xf5   :  { %1451 = vmatpush1.bf16.msra.mxu1 %v2767_v6  ;;  %v2820_v6 = vld [vmem:[#allocation7 + $0x4ec] ss:$16 sps:$4 sm:$0xff]  }
  0xf6   :  { %1452 = vmatprep.subr.bf16.mxu1 %v2772_v51  ;;  %v2892_v51 = vld [vmem:[#allocation8 + $0xf4] ss:$8 sps:$4 sm:$0xff]  }
  0xf7   :  { %1941 = vmatpush1.bf16.msra.mxu0 %v2863_v50 }
  0xf8   :  { %1942 = vmatprep.subr.bf16.mxu0 %v2868_v53 }
  0xf9   :  { %1453 = vmatpush1.bf16.msra.mxu1 %v2770_v28  ;;  %v2821_v28 = vld [vmem:[#allocation7 + $0x508] ss:$16 sps:$4 sm:$0xff]  }
  0xfa   :  { %1454 = vmatprep.subr.bf16.mxu1 %v2775_v30  ;;  %v2895_v30 = vld [vmem:[#allocation8 + $0x104] ss:$8 sps:$4 sm:$0xff]  }
  0xfb   :  { %1943 = vmatpush1.bf16.msra.mxu0 %v2866_v55 }
  0xfc   :  { %1944 = vmatprep.subr.bf16.mxu0 %v2871_v57 }
  0xfd   :  { %1455 = vmatpush1.bf16.msra.mxu1 %v2773_v32  ;;  %v2829_v32 = vld [vmem:[#allocation7 + $0x54c] ss:$16 sps:$4 sm:$0xff]  }
  0xfe   :  { %1456 = vmatprep.subr.bf16.mxu1 %v2778_v35  ;;  %v2832_v35 = vld [vmem:[#allocation7 + $0x56c] ss:$16 sps:$4 sm:$0xff]  }
  0xff   :  { %1945 = vmatpush1.bf16.msra.mxu0 %v2869_v59 }
 0x100   :  { %1946 = vmatprep.subr.bf16.mxu0 %v2874_v61 }
 0x101   :  { %1457 = vmatpush1.bf16.msra.mxu1 %v2776_v37  ;;  %v2835_v37 = vld [vmem:[#allocation7 + $0x58c] ss:$16 sps:$4 sm:$0xff]  }
 0x102   :  { %1458 = vmatprep.subr.bf16.mxu1 %v2781_v39  ;;  %v2838_v39 = vld [vmem:[#allocation7 + $0x5ac] ss:$16 sps:$4 sm:$0xff]  }
 0x103   :  { %1947 = vmatpush1.bf16.msra.mxu0 %v2872_v63 }
 0x104   :  { %1948 = vmatprep.subr.bf16.mxu0 %v2877_v1  ;;  %v2893_v1 = vld [vmem:[#allocation8 + $0x100] ss:$8 sps:$4 sm:$0xff]  }
 0x105   :  { %1459 = vmatpush1.bf16.msra.mxu1 %v2779_v41  ;;  %v2841_v41 = vld [vmem:[#allocation7 + $0x5cc] ss:$16 sps:$4 sm:$0xff]  }
 0x106   :  { %1460 = vmatprep.subr.bf16.mxu1 %v2784_v43  ;;  %v2844_v43 = vld [vmem:[#allocation7 + $0x5ec] ss:$16 sps:$4 sm:$0xff]  }
 0x107   :  { %1949 = vmatpush1.bf16.msra.mxu0 %v2875_v4  ;;  %v2941_v4 = vld [vmem:[#allocation10 + $0x40] sm:$0xff]  }
 0x108   :  { %1950 = vmatprep.subr.bf16.mxu0 %v2880_v5  ;;  %v2942_v5 = vld [vmem:[#allocation10] sm:$0xff]  }
 0x109   :  { %1461 = vmatpush1.bf16.msra.mxu1 %v2782_v45 }
 0x10a   :  { %1462 = vmatprep.subr.bf16.mxu1 %v2787_v47 }
 0x10b   :  { %1951 = vmatpush1.bf16.msra.mxu0 %v2878_v10  ;;  %v2901_v10 = vld [vmem:[#allocation8 + $0x124] ss:$8 sps:$4 sm:$0xff]  }
 0x10c   :  { %1952 = vmatprep.subr.bf16.mxu0 %v2883_v11  ;;  %v2944_v11 = vld [vmem:[#allocation10 + $0x8] sm:$0xff]  }
 0x10d   :  { %1463 = vmatpush1.bf16.msra.mxu1 %v2785_v49  ;;  %v287_v49 = vld [vmem:[#allocation5] sm:$0xff] }
 0x10e   :  { %1464 = vmatprep.subr.bf16.mxu1 %v2790_v52  ;;  %v289_v50 = vunpack.c.l.bf16 %v287_v49  ;;  %v290_v52 = vunpack.c.h.bf16 %v287_v49 }
 0x10f   :  { %1953 = vmatpush1.bf16.msra.mxu0 %v2881_v15  ;;  %v2904_v15 = vld [vmem:[#allocation8 + $0x134] ss:$8 sps:$4 sm:$0xff]  }
 0x110   :  { %1954 = vmatprep.subr.bf16.mxu0 %v2886_v16  ;;  %v2946_v16 = vld [vmem:[#allocation10 + $0x10] sm:$0xff]  }
 0x111   :  { %1465 = vmatpush1.bf16.msra.mxu1 %v2788_v54 }
 0x112   :  { %1466 = vmatprep.subr.bf16.mxu1 %v2793_v56 }
 0x115   :  { %1467 = vmatpush1.bf16.msra.mxu1 %v2791_v58 }
 0x116   :  { %1468 = vmatprep.subr.bf16.mxu1 %v2796_v60 }
 0x119   :  { %1469 = vmatpush1.bf16.msra.mxu1 %v2794_v62 }
 0x11a   :  { %1479 = vmatprep.subr.bf16.mxu1 %v2799_v0 }
 0x11c   :  { %1471 = vmatmul.mubr.bf16.vlgmr.msra.gmra.mrb[4].mxu1 %v3235_v7  ;;  %v2806_v7 = vld [vmem:[#allocation7 + $0x468] ss:$16 sps:$4 sm:$0xff]  }
 0x11d   :  { %1480 = vmatpush1.bf16.msra.mxu1 %v2797_v2  ;;  %1511 = vmatprep.mubr.bf16.mxu1 %v3244_v34  ;;  %v2884_v34 = vld [vmem:[#allocation8 + $0xd0] ss:$8 sps:$4 sm:$0xff]  }
 0x11e   :  { %1481 = vmatprep.subr.bf16.mxu1 %v2802_v3  ;;  %1955 = vmatpush1.bf16.msra.mxu0 %v2884_v34  ;;  %v2898_v3 = vld [vmem:[#allocation8 + $0x114] ss:$8 sps:$4 sm:$0xff]   ;;  %v2907_v34 = vld [vmem:[#allocation8 + $0x144] ss:$8 sps:$4 sm:$0xff]  }
 0x11f   :  { %1956 = vmatprep.subr.bf16.mxu0 %v2889_v22  ;;  %v2950_v22 = vld [vmem:[#allocation10 + $0x20] sm:$0xff]  }
 0x121   :  { %1482 = vmatpush1.bf16.msra.mxu1 %v2800_v8  ;;  %v2943_v8 = vld [vmem:[#allocation10 + $0x48] sm:$0xff]  }
 0x122   :  { %1483 = vmatprep.subr.bf16.mxu1 %v2805_v9  ;;  %1957 = vmatpush1.bf16.msra.mxu0 %v2887_v24  ;;  %v2896_v9 = vld [vmem:[#allocation8 + $0x110] ss:$8 sps:$4 sm:$0xff]  }
 0x123   :  { %1958 = vmatprep.subr.bf16.mxu0 %v2892_v51  ;;  %v2908_v24 = vld [vmem:[#allocation8 + $0x150] ss:$8 sps:$4 sm:$0xff]   ;;  %v2911_v51 = vld [vmem:[#allocation8 + $0x160] ss:$8 sps:$4 sm:$0xff]  }
 0x125   :  { %1484 = vmatpush1.bf16.msra.mxu1 %v2803_v13  ;;  %v2945_v13 = vld [vmem:[#allocation10 + $0x50] sm:$0xff]  }
 0x126   :  { %1485 = vmatprep.subr.bf16.mxu1 %v2808_v14  ;;  %1959 = vmatpush1.bf16.msra.mxu0 %v2890_v26  ;;  %v2899_v14 = vld [vmem:[#allocation8 + $0x120] ss:$8 sps:$4 sm:$0xff]   ;;  %v2914_v26 = vld [vmem:[#allocation8 + $0x170] ss:$8 sps:$4 sm:$0xff]  }
 0x127   :  { %1969 = vmatprep.subr.bf16.mxu0 %v2895_v30  ;;  %v2920_v30 = vld [vmem:[#allocation8 + $0x190] ss:$8 sps:$4 sm:$0xff]  }
 0x129   :  { %1486 = vmatpush1.bf16.msra.mxu1 %v2806_v7  ;;  %v2947_v7 = vld [vmem:[#allocation10 + $0x58] sm:$0xff]  }
 0x12a   :  { %1487 = vmatprep.subr.bf16.mxu1 %v2811_v17  ;;  %v2902_v17 = vld [vmem:[#allocation8 + $0x130] ss:$8 sps:$4 sm:$0xff]  }
 0x12d   :  { %1488 = vmatpush1.bf16.msra.mxu1 %v2809_v18  ;;  %v2948_v18 = vld [vmem:[#allocation10 + $0x18] sm:$0xff]  }
 0x12e   :  { %1489 = vmatprep.subr.bf16.mxu1 %v2814_v19  ;;  %v2949_v19 = vld [vmem:[#allocation10 + $0x60] sm:$0xff]  }
 0x131   :  { %1490 = vmatpush1.bf16.msra.mxu1 %v2812_v20  ;;  %v2905_v20 = vld [vmem:[#allocation8 + $0x140] ss:$8 sps:$4 sm:$0xff]  }
 0x132   :  { %1491 = vmatprep.subr.bf16.mxu1 %v2817_v21  ;;  %v2910_v21 = vld [vmem:[#allocation8 + $0x154] ss:$8 sps:$4 sm:$0xff]  }
 0x135   :  { %1492 = vmatpush1.bf16.msra.mxu1 %v2815_v23  ;;  %v2951_v23 = vld [vmem:[#allocation10 + $0x68] sm:$0xff]  }
 0x136   :  { %1493 = vmatprep.subr.bf16.mxu1 %v2820_v6  ;;  %v2913_v6 = vld [vmem:[#allocation8 + $0x164] ss:$8 sps:$4 sm:$0xff]  }
 0x139   :  { %1494 = vmatpush1.bf16.msra.mxu1 %v2818_v25  ;;  %v2916_v25 = vld [vmem:[#allocation8 + $0x174] ss:$8 sps:$4 sm:$0xff]  }
 0x13a   :  { %1495 = vmatprep.subr.bf16.mxu1 %v2823_v27  ;;  %v2919_v27 = vld [vmem:[#allocation8 + $0x184] ss:$8 sps:$4 sm:$0xff]  }
 0x13d   :  { %1496 = vmatpush1.bf16.msra.mxu1 %v2821_v28  ;;  %v2917_v28 = vld [vmem:[#allocation8 + $0x180] ss:$8 sps:$4 sm:$0xff]  }
 0x13e   :  { %1497 = vmatprep.subr.bf16.mxu1 %v2826_v29  ;;  %v2922_v29 = vld [vmem:[#allocation8 + $0x194] ss:$8 sps:$4 sm:$0xff]  }
 0x141   :  { %1498 = vmatpush1.bf16.msra.mxu1 %v2824_v31  ;;  %v2925_v31 = vld [vmem:[#allocation8 + $0x1a4] ss:$8 sps:$4 sm:$0xff]  }
 0x142   :  { %1499 = vmatprep.subr.bf16.mxu1 %v2829_v32  ;;  %v2923_v32 = vld [vmem:[#allocation8 + $0x1a0] ss:$8 sps:$4 sm:$0xff]  }
 0x145   :  { %1500 = vmatpush1.bf16.msra.mxu1 %v2827_v33  ;;  %v2928_v33 = vld [vmem:[#allocation8 + $0x1b4] ss:$8 sps:$4 sm:$0xff]  }
 0x146   :  { %1501 = vmatprep.subr.bf16.mxu1 %v2832_v35  ;;  %v2926_v35 = vld [vmem:[#allocation8 + $0x1b0] ss:$8 sps:$4 sm:$0xff]  }
 0x149   :  { %1502 = vmatpush1.bf16.msra.mxu1 %v2830_v36  ;;  %v2931_v36 = vld [vmem:[#allocation8 + $0x1c4] ss:$8 sps:$4 sm:$0xff]  }
 0x14a   :  { %1503 = vmatprep.subr.bf16.mxu1 %v2835_v37  ;;  %v2929_v37 = vld [vmem:[#allocation8 + $0x1c0] ss:$8 sps:$4 sm:$0xff]  }
 0x14d   :  { %1504 = vmatpush1.bf16.msra.mxu1 %v2833_v38  ;;  %v2934_v38 = vld [vmem:[#allocation8 + $0x1d4] ss:$8 sps:$4 sm:$0xff]  }
 0x14e   :  { %1505 = vmatprep.subr.bf16.mxu1 %v2838_v39  ;;  %v2932_v39 = vld [vmem:[#allocation8 + $0x1d0] ss:$8 sps:$4 sm:$0xff]  }
 0x151   :  { %1506 = vmatpush1.bf16.msra.mxu1 %v2836_v40  ;;  %v2937_v40 = vld [vmem:[#allocation8 + $0x1e4] ss:$8 sps:$4 sm:$0xff]  }
 0x152   :  { %1507 = vmatprep.subr.bf16.mxu1 %v2841_v41  ;;  %v2935_v41 = vld [vmem:[#allocation8 + $0x1e0] ss:$8 sps:$4 sm:$0xff]  }
 0x155   :  { %1508 = vmatpush1.bf16.msra.mxu1 %v2839_v42  ;;  %v2940_v42 = vld [vmem:[#allocation8 + $0x1f4] ss:$8 sps:$4 sm:$0xff]  }
 0x156   :  { %1509 = vmatprep.subr.bf16.mxu1 %v2844_v43  ;;  %v2938_v43 = vld [vmem:[#allocation8 + $0x1f0] ss:$8 sps:$4 sm:$0xff]  }
 0x159   :  { %1510 = vmatpush1.bf16.msra.mxu1 %v2842_v44  ;;  %v288_v44 = vld [vmem:[#allocation5 + $0x8] sm:$0xff] }
 0x15a   :  { %2493 = vmatprep.subr.bf16.mxu1 %v2941_v4 }
 0x15c   :  { %1512 = vmatmul.mubr.bf16.vlgmr.msra.gmra.mrb[4].mxu1 %v3249_v12 }
 0x15d   :  { %2494 = vmatpush3.bf16.msra.mxu1 %v2942_v5 }
 0x15e   :  { %2495 = vmatprep.subr.bf16.mxu1 %v2943_v8 }
 0x161   :  { %2496 = vmatpush3.bf16.msra.mxu1 %v2944_v11 }
 0x162   :  { %2497 = vmatprep.subr.bf16.mxu1 %v2945_v13 }
 0x165   :  { %2498 = vmatpush3.bf16.msra.mxu1 %v2946_v16 }
 0x166   :  { %2499 = vmatprep.subr.bf16.mxu1 %v2947_v7 }
 0x169   :  { %2500 = vmatpush3.bf16.msra.mxu1 %v2948_v18 }
 0x16a   :  { %2501 = vmatprep.subr.bf16.mxu1 %v2949_v19 }
 0x16d   :  { %2502 = vmatpush3.bf16.msra.mxu1 %v2950_v22 }
 0x16e   :  { %2503 = vmatprep.subr.bf16.mxu1 %v2951_v23 }
 0x16f   :  { %v1308_v45 = vpop.f32.mrb[0].mxu1 }
 0x170   :  { %v1310_v46 = vpop.f32.mrb[1].mxu1  ;;  %v1309_v53 = vadd.f32 %v1308_v45, %v289_v50  ;;  %v291_v45 = vunpack.c.l.bf16 %v288_v44 }
 0x171   :  { %v1312_v47 = vpop.f32.mrb[2].mxu1  ;;  %v1311_v54 = vadd.f32 %v1310_v46, %v290_v52  ;;  %v292_v46 = vunpack.c.h.bf16 %v288_v44 }
 0x172   :  { %v1313_v48 = vpop.f32.mrb[3].mxu1 }
 0x1b0   :  { %v1390_v55 = vpop.f32.mrb[0].mxu0 }
 0x1b1   :  { %v2516_v56 = vadd.f32 %v1390_v55, %v1309_v53  ;;  %v1392_v57 = vpop.f32.mrb[1].mxu0 }
 0x1b2   :  { %v2518_v58 = vadd.f32 %v1392_v57, %v1311_v54  ;;  %v1394_v59 = vpop.f32.mrb[2].mxu0 }
 0x1b3   :  { %v1520_v60 = vmul.f32 0.2, %v2516_v56  ;;  %v1395_v61 = vpop.f32.mrb[3].mxu0 }
 0x1b4   :  { %v1521_v62 = vmul.f32 0.2, %v2518_v58  ;;  %v2953_v61 = vld [vmem:[#allocation10 + $0x70] sm:$0xff]  }
 0x1b5   :  { %v1524_v63 = vmax.f32 %v2516_v56, %v1520_v60  ;;  %v2952_v60 = vld [vmem:[#allocation10 + $0x28] sm:$0xff]  }
 0x1b6   :  { %v1525_v0 = vmax.f32 %v2518_v58, %v1521_v62  ;;  %2504 = vmatpush3.bf16.msra.mxu1 %v2952_v60  ;;  %v2954_v62 = vld [vmem:[#allocation10 + $0x30] sm:$0xff]  }
 0x1b7   :  { %v1528_v2 = vpack.c.bf16 %v1524_v63, %v1524_v63  ;;  %2505 = vmatprep.subr.bf16.mxu1 %v2953_v61  ;;  %v2955_v63 = vld [vmem:[#allocation10 + $0x78] sm:$0xff]  }
 0x1b8   :  { %v1529_v12 = vpack.c.bf16 %v1525_v0, %v1525_v0  ;;  %v2956_v0 = vld [vmem:[#allocation10 + $0x38] sm:$0xff]  }
 0x1ba   :  { %1960 = vmatprep.mubr.bf16.mxu0 %v1529_v12  ;;  %2506 = vmatpush3.bf16.msra.mxu1 %v2954_v62  ;;  %v1598_v12 = vlaneseq }
 0x1bb   :  { %1961 = vmatmul.mubr.bf16.vlgmr.msra.gmra.mrb[4].mxu0 %v1528_v2  ;;  %2507 = vmatprep.subr.bf16.mxu1 %v2955_v63 }
 0x1bc   :  { %1970 = vmatpush1.bf16.msra.mxu0 %v2893_v1  ;;  %v1599_v1 = vshrl.u32 %v1598_v12, 7 }
 0x1bd   :  { %1971 = vmatprep.subr.bf16.mxu0 %v2898_v3  ;;  %v1596_v3 = vld [vmem:[%s3279_s4] sm:$0x3] }
 0x1be   :  { %2508 = vmatpush3.bf16.msra.mxu1 %v2956_v0  ;;  %v1600_v2 = vsub.s32 0, %v1599_v1  ;;  %v1604_v4 = vsub.s32 1, %v1599_v1 }
 0x1c0   :  { %1972 = vmatpush1.bf16.msra.mxu0 %v2896_v9  ;;  %v1601_v5 = vrot.slane %v1596_v3, %v1600_v2  ;;  %v1605_v8 = vrot.slane %v1596_v3, %v1604_v4 }
 0x1c1   :  { %1973 = vmatprep.subr.bf16.mxu0 %v2901_v10 }
 0x1c4   :  { %1974 = vmatpush1.bf16.msra.mxu0 %v2899_v14 }
 0x1c5   :  { %1975 = vmatprep.subr.bf16.mxu0 %v2904_v15 }
 0x1c8   :  { %1976 = vmatpush1.bf16.msra.mxu0 %v2902_v17 }
 0x1c9   :  { %1977 = vmatprep.subr.bf16.mxu0 %v2907_v34 }
 0x1cc   :  { %1978 = vmatpush1.bf16.msra.mxu0 %v2905_v20 }
 0x1cd   :  { %1979 = vmatprep.subr.bf16.mxu0 %v2910_v21  ;;  %v2476_v21 = vld [vmem:[%s3281_s6] ss:$0 sm:$0xff] }
 0x1d0   :  { %1980 = vmatpush1.bf16.msra.mxu0 %v2908_v24 }
 0x1d1   :  { %1981 = vmatprep.subr.bf16.mxu0 %v2913_v6 }
 0x1d4   :  { %1982 = vmatpush1.bf16.msra.mxu0 %v2911_v51 }
 0x1d5   :  { %1983 = vmatprep.subr.bf16.mxu0 %v2916_v25 }
 0x1d8   :  { %1984 = vmatpush1.bf16.msra.mxu0 %v2914_v26 }
 0x1d9   :  { %1985 = vmatprep.subr.bf16.mxu0 %v2919_v27 }
 0x1dc   :  { %1986 = vmatpush1.bf16.msra.mxu0 %v2917_v28 }
 0x1dd   :  { %1987 = vmatprep.subr.bf16.mxu0 %v2922_v29 }
 0x1e0   :  { %1988 = vmatpush1.bf16.msra.mxu0 %v2920_v30 }
 0x1e1   :  { %1989 = vmatprep.subr.bf16.mxu0 %v2925_v31 }
 0x1e4   :  { %1990 = vmatpush1.bf16.msra.mxu0 %v2923_v32 }
 0x1e5   :  { %1991 = vmatprep.subr.bf16.mxu0 %v2928_v33 }
 0x1e8   :  { %1992 = vmatpush1.bf16.msra.mxu0 %v2926_v35 }
 0x1e9   :  { %1993 = vmatprep.subr.bf16.mxu0 %v2931_v36 }
 0x1ec   :  { %1994 = vmatpush1.bf16.msra.mxu0 %v2929_v37 }
 0x1ed   :  { %1995 = vmatprep.subr.bf16.mxu0 %v2934_v38 }
 0x1f0   :  { %1996 = vmatpush1.bf16.msra.mxu0 %v2932_v39 }
 0x1f1   :  { %1997 = vmatprep.subr.bf16.mxu0 %v2937_v40 }
 0x1f4   :  { %1998 = vmatpush1.bf16.msra.mxu0 %v2935_v41 }
 0x1f5   :  { %1999 = vmatprep.subr.bf16.mxu0 %v2940_v42 }
 0x1f8   :  { %2000 = vmatpush1.bf16.msra.mxu0 %v2938_v43 }
 0x22f   :  { %v1513_v47 = vpop.f32.mrb[4].mxu1 }
 0x230   :  { %v2519_v48 = vadd.f32 %v1513_v47, %v291_v45  ;;  %v1515_v49 = vpop.f32.mrb[5].mxu1 }
 0x231   :  { %v2520_v50 = vadd.f32 %v1515_v49, %v292_v46  ;;  %v1517_v52 = vpop.f32.mrb[6].mxu1 }
 0x232   :  { %v1522_v53 = vmul.f32 0.2, %v2519_v48  ;;  %v1518_v54 = vpop.f32.mrb[7].mxu1 }
 0x233   :  { %v1523_v55 = vmul.f32 0.2, %v2520_v50 }
 0x234   :  { %v1526_v56 = vmax.f32 %v2519_v48, %v1522_v53 }
 0x235   :  { %v1527_v57 = vmax.f32 %v2520_v50, %v1523_v55 }
 0x236   :  { %v1530_v59 = vpack.c.bf16 %v1526_v56, %v1526_v56 }
 0x237   :  { %v1531_v58 = vpack.c.bf16 %v1527_v57, %v1527_v57 }
 0x239   :  { %2001 = vmatprep.mubr.bf16.mxu0 %v1531_v58 }
 0x23a   :  { %2002 = vmatmul.mubr.bf16.vlgmr.msra.gmra.mrb[4].mxu0 %v1530_v59 }
 0x30d   :  { %v2003_v9 = vpop.f32.mrb[4].mxu0 }
 0x30e   :  { %v2521_v10 = vadd.f32 %v2003_v9, %v1601_v5  ;;  %v2005_v11 = vpop.f32.mrb[5].mxu0 }
 0x30f   :  { %v2522_v13 = vadd.f32 %v2005_v11, %v1605_v8  ;;  %v2007_v14 = vpop.f32.mrb[6].mxu0 }
 0x310   :  { %v2010_v15 = vmul.f32 0.2, %v2521_v10  ;;  %v2008_v16 = vpop.f32.mrb[7].mxu0 }
 0x311   :  { %v2011_v7 = vmul.f32 0.2, %v2522_v13 }
 0x312   :  { %v2012_v17 = vmax.f32 %v2521_v10, %v2010_v15 }
 0x313   :  { %v2013_v34 = vmax.f32 %v2522_v13, %v2011_v7 }
 0x314   :  { %v2014_v19 = vpack.c.bf16 %v2012_v17, %v2012_v17 }
 0x315   :  { %v2015_v18 = vpack.c.bf16 %v2013_v34, %v2013_v34 }
 0x317   :  { %2183 = vmatprep.mubr.bf16.mxu1 %v2015_v18 }
 0x318   :  { %2184 = vmatmul.mubr.bf16.vlgmr.msra.gmra.mrb[8].mxu1 %v2014_v19 }
 0x3eb   :  { %v2509_v20 = vpop.f32.mrb[8].mxu1 }
 0x3ec   :  { %v2510_v22 = vpop.f32.mrb[9].mxu1 }
 0x3ed   :  { %v2511_v23 = vadd.f32 %v2510_v22, %v2509_v20  ;;  %v2512_v24 = vpop.f32.mrb[10].mxu1 }
 0x3ee   :  { %v2513_v6 = vpop.f32.mrb[11].mxu1 }
 0x3ef   :  { %v2186_v51 = vadd.f32 %v2511_v23, %v2476_v21 }
 0x3f1   :  { %v2191_v25 = vsub.f32 0.0, %v2186_v51 }
 0x3f3   :  { %v2192_v26 = vmul.f32 1.442695, %v2191_v25 }
 0x3f5   :  { %2957 = vpow2.f32 %v2192_v26 }
 0x3ff   :  { %v2958_v27 = vpop.eup %2957 }
 0x400   :  { %v2194_v28 = vadd.f32 1.0, %v2958_v27 }
 0x402   :  { %2959 = vrcp.f32 %v2194_v28 }
 0x40c   :  { %v2960_v29 = vpop.eup %2959 }
 0x40d   :  { %2196 = vst [vmem:[#allocation11] sm:$0xff] %v2960_v29 }
 0x40e   :  { %3082 = shalt.err (!%p3079_p2)
}
 0x40f   :  { %s3083_s21 = scalar_lea.hbm %s3282_s7, 128 }
 0x410   :  { %p3084_p3 = scmp.ne.s32.totalorder %s3282_s7, %s3083_s21  ;;  %p3087_p4 = scmp.lt.u32.totalorder %s3083_s21, %s3282_s7 }
 0x412   :  { %p3089_p5 = pnand %p3087_p4, %p3084_p3 }
 0x414   :  { %3092 = shalt.err (!%p3089_p5)
}
 0x415   :  { %2206 = dma.vmem_to_hbm [thread:$0]  %s2204_s18, 128, %s3282_s7, [#allocation4]  }
 0x416   :  { %3099 = dma.done.wait [#allocation4], 128  }
 0x417   :  { %3100 = vsyncadd [#allocation4], 4294967168 }
 0x418   :  { %2210 = vsyncpa [#allocation3], 1 }
 0x419   :  { %2211 = vsyncpa [#allocation6], 1 }
 0x41a   :  { %2212 = vsyncpa [#allocation9], 1 }
 0x41b   :  { %2213 = vsyncpa [#allocation4], 1 }

</bundles_post_ra>
